<compile_context>
chip_gen: v5e
topology: v5e:2x2
jax: 0.10.0
libtpu: 0.0.40
codegen_flags: <defaults>
</compile_context>

<pallas_src>
import jax
import jax.numpy as jnp
from jax.experimental import pallas as pl
from jax.experimental.pallas import tpu as pltpu


# ----------------------------- Pallas kernel -------------------------------
def model_driven_kernel(params_ref, Di_ref, s_ref, v_ref, Btx_ref, BtB_ref,
                        s_out_ref, v_out_ref):
    # params_ref (SMEM, f32[24]):
    #   [0:8]   fc1..fc8 weights
    #   [8:16]  fc1..fc8 biases
    #   [16:20] alpha1 of mod1..mod4
    #   [20:24] alpha2 of mod1..mod4
    # Hoist every SMEM scalar read to the top of the kernel (before any waits).
    fc_w = [params_ref[i] for i in range(8)]
    fc_b = [params_ref[8 + i] for i in range(8)]
    a1 = [params_ref[16 + i] for i in range(4)]
    a2 = [params_ref[20 + i] for i in range(4)]

    TB = Di_ref.shape[0]
    N = Di_ref.shape[-1]

    def load_vec(ref):
        # Handles both 2D (TB, N) and 3D (TB, 1, N) vector blocks.
        return ref[...].reshape(TB, N)

    s = load_vec(s_ref)
    v = load_vec(v_ref)
    Btx = load_vec(Btx_ref)

    # Contraction chunk: one 128-lane vreg width when N allows.
    CK = 128 if (N % 128 == 0) else N
    n_chunks = N // CK
    # Row tile R: keep the live (TB, R, CK) f32 accumulator <= ~128 KiB so it
    # stays in vregs (64 x 4 KiB file) instead of spilling to VMEM.
    r_target = max(1, (32 * 1024) // max(TB * CK, 1))   # TB*R*CK <= 32768 elems
    R = min(N, r_target)
    if R >= 8:
        R = (R // 8) * 8

    def bmv(M_ref, x):
        # Batched mat-vec (TB, N, N) @ (TB, N) -> (TB, N), streamed from the
        # VMEM ref in (TB, R, CK) slabs; f32 multiply-add on the VPU, one XLU
        # lane reduce per row tile.
        if n_chunks < 8:
            x_bc = [x[:, c * CK:(c + 1) * CK][:, None, :] for c in range(n_chunks)]
        outs = []
        for r0 in range(0, N, R):
            rs = min(R, N - r0)
            if n_chunks < 8:
                acc = None
                for c in range(n_chunks):
                    m = M_ref[:, r0:r0 + rs, c * CK:(c + 1) * CK].astype(jnp.float32)
                    p = m * x_bc[c]
                    acc = p if acc is None else acc + p
            else:
                # Large-N path: bound bundle size & live ranges with a real loop.
                def body(c, acc):
                    start = pl.multiple_of(c * CK, CK)
                    m = M_ref[:, r0:r0 + rs, pl.ds(start, CK)].astype(jnp.float32)
                    xc = jax.lax.dynamic_slice_in_dim(x, start, CK, axis=1)
                    return acc + m * xc[:, None, :]
                acc = jax.lax.fori_loop(0, n_chunks, body,
                                        jnp.zeros((TB, rs, CK), jnp.float32))
            outs.append(jnp.sum(acc, axis=-1))            # (TB, rs) lane reduce
        return outs[0] if len(outs) == 1 else jnp.concatenate(outs, axis=-1)

    def xv_block(s, v, alpha1, alpha2):
        HtHs = bmv(BtB_ref, s)
        Dr = bmv(Di_ref, Btx - HtHs)
        z = s + Dr + alpha1 * v
        s_new = (1.0 - alpha2) * z + alpha2 * s
        return s_new, Dr

    for i in range(4):
        # two Linear(1, 1) layers on v (scalar affine)
        v = v * fc_w[2 * i] + fc_b[2 * i]
        v = v * fc_w[2 * i + 1] + fc_b[2 * i + 1]
        s, v = xv_block(s, v, a1[i], a2[i])
        if i < 3:          # tanh after mod1..mod3, not after mod4
            s = jnp.tanh(s)

    s_out_ref[...] = s.reshape(s_out_ref.shape)
    v_out_ref[...] = v.reshape(v_out_ref.shape)


# ------------------------------- helpers ------------------------------------
def _vmem_capacity_bytes():
    try:
        info = pltpu.get_tpu_info()
        for attr in ("vmem_capacity_bytes", "vmem_bytes", "vmem_size_bytes"):
            cap = getattr(info, attr, None)
            if cap:
                return int(cap)
    except Exception:
        pass
    return 64 * 1024 * 1024      # conservative fallback: v7x per-TensorCore VMEM


def _divisors(n):
    return [d for d in range(1, n + 1) if n % d == 0]


# ------------------------------- wrapper ------------------------------------
def model_driven_forward(params, Di, s, v, Btx, BtB, *,
                         matrix_dtype=jnp.bfloat16):
    """Inputs follow the PyTorch shapes: Di/BtB (B,N,N), s/v/Btx (B,N,1).

    matrix_dtype=bfloat16 (default) halves the dominant HBM traffic; the kernel
    always accumulates in float32.  Pass matrix_dtype=jnp.float32 for a
    bit-faithful match of the f32 reference.
    """
    B, N, _ = Di.shape
    f32 = jnp.float32
    mat_bytes = jnp.dtype(matrix_dtype).itemsize

    Di_m = Di.astype(matrix_dtype)
    BtB_m = BtB.astype(matrix_dtype)
    s2 = s.astype(f32).reshape(B, N)
    v2 = v.astype(f32).reshape(B, N)
    Btx2 = Btx.astype(f32).reshape(B, N)

    # ---- per-generation tile sizing (no hard TB cap) ------------------------
    vmem_cap = _vmem_capacity_bytes()
    budget = int(vmem_cap * 0.80)                 # headroom for compiler scratch
    # per-batch-row VMEM: 2 matrices double-buffered + 7 vector streams
    # (5 in + 2 out) double-buffered.
    vec_per_b = 2 * 7 * N * 4
    per_b = 2 * 2 * N * N * mat_bytes + vec_per_b
    single_buffer_mats = False
    if per_b > budget:
        # v7x large-N regime: single-buffer the matrix streams so even TB=1 fits.
        single_buffer_mats = True
        per_b = 2 * 1 * N * N * mat_bytes + vec_per_b
        # TODO(synk): if even single-buffered TB=1 exceeds VMEM, row-tile the
        # matrices with an inner pltpu.emit_pipeline (partial HtHs/Dr accum).

    tb_max = max(1, min(B, budget // max(per_b, 1)))
    divs = [d for d in _divisors(B) if d <= tb_max]   # TB | B => no matrix padding
    TB = max(divs)
    # Prefer an even grid length >= 2 (balances v7x's two TensorCores) as long
    # as it costs at most a 2x tile-size reduction.  Free on v5e/v6e.
    even = [d for d in divs if (B // d) % 2 == 0]
    if even and max(even) * 2 >= TB:
        TB = max(even)
    grid = (B // TB,)

    # Vector layout: dense 2D (B, N) blocks when the sublane rule allows,
    # else (B, 1, N) blocks whose last two dims equal the full array dims.
    vectors_2d = (TB % 8 == 0) or (TB == B)
    if vectors_2d:
        vec_shape, vec_block = (B, N), (TB, N)
    else:
        vec_shape, vec_block = (B, 1, N), (TB, 1, N)
        s2 = s2.reshape(B, 1, N)
        v2 = v2.reshape(B, 1, N)
        Btx2 = Btx2.reshape(B, 1, N)

    mat_kwargs = {}
    if single_buffer_mats:
        mat_kwargs = dict(pipeline_mode=pl.Buffered(1))
    # index_maps receive the scalar-prefetch ref as a trailing positional arg.
    mat_spec = pl.BlockSpec((TB, N, N), lambda b, p: (b, 0, 0), **mat_kwargs)
    n_trail = len(vec_block) - 1
    vec_spec = pl.BlockSpec(vec_block, lambda b, p: (b,) + (0,) * n_trail)

    cost = pl.CostEstimate(
        flops=16 * B * N * N + 40 * B * N,
        transcendentals=3 * B * N,
        bytes_accessed=2 * B * N * N * mat_bytes + 7 * B * N * 4,
    )
    vmem_need = TB * per_b + (4 << 20)
    vmem_limit = int(min(max(vmem_need, 32 << 20), vmem_cap - (4 << 20)))

    s_out, v_out = pl.pallas_call(
        model_driven_kernel,
        out_shape=(jax.ShapeDtypeStruct(vec_shape, f32),
                   jax.ShapeDtypeStruct(vec_shape, f32)),
        grid_spec=pltpu.PrefetchScalarGridSpec(
            num_scalar_prefetch=1,
            grid=grid,
            in_specs=[mat_spec, vec_spec, vec_spec, vec_spec, mat_spec],
            out_specs=(vec_spec, vec_spec),
        ),
        compiler_params=pltpu.CompilerParams(
            dimension_semantics=("parallel",),
            vmem_limit_bytes=vmem_limit,
        ),
        cost_estimate=cost,
        input_output_aliases={2: 0, 3: 1},   # s -> s_out, v -> v_out
    )(params.astype(f32), Di_m, s2, v2, Btx2, BtB_m)

    return s_out.reshape(B, N, 1), v_out.reshape(B, N, 1)


# --------------------------- pure-JAX reference ------------------------------
def model_driven_ref(params, Di, s, v, Btx, BtB):
    p = params

    def bmm(M, x):  # (B,N,N) @ (B,N,1), true-f32 accumulation
        return jnp.einsum('bij,bjk->bik', M, x,
                          precision=jax.lax.Precision.HIGHEST)

    def xv_block(s, v, a1, a2):
        HtHs = bmm(BtB, s)
        Dr = bmm(Di, Btx - HtHs)
        z = s + Dr + a1 * v
        s_new = (1.0 - a2) * z + a2 * s
        return s_new, Dr

    for i in range(4):
        v = v * p[2 * i] + p[8 + 2 * i]
        v = v * p[2 * i + 1] + p[8 + 2 * i + 1]
        s, v = xv_block(s, v, p[16 + i], p[20 + i])
        if i < 3:
            s = jnp.tanh(s)
    return s, v


# ---------------------------------- main -------------------------------------
if __name__ == "__main__":
    key = jax.random.PRNGKey(0)
    k_di, k_s, k_v, k_btx, k_btb, k_w, k_b, k_a1 = jax.random.split(key, 8)

    # Deterministic parameters (shapes of the torch module):
    #   fc1..fc8: Linear(1,1) -> 8 weights + 8 biases
    #   mod1..mod4: alpha1 = rand(1), alpha2 = 0.5
    fc_w = jax.random.uniform(k_w, (8,), jnp.float32, -1.0, 1.0)
    fc_b = jax.random.uniform(k_b, (8,), jnp.float32, -1.0, 1.0)
    alpha1 = jax.random.uniform(k_a1, (4,), jnp.float32, 0.0, 1.0)
    alpha2 = jnp.full((4,), 0.5, dtype=jnp.float32)
    params = jnp.concatenate([fc_w, fc_b, alpha1, alpha2]).astype(jnp.float32)

    # --- case 1: tiny shapes, f32 matrices (strict match vs. reference) ------
    B, N = 2, 8
    Di = jax.random.normal(k_di, (B, N, N), dtype=jnp.float32) * 0.1
    s = jax.random.normal(k_s, (B, N, 1), dtype=jnp.float32)
    v = jax.random.normal(k_v, (B, N, 1), dtype=jnp.float32)
    Btx = jax.random.normal(k_btx, (B, N, 1), dtype=jnp.float32)
    BtB = jax.random.normal(k_btb, (B, N, N), dtype=jnp.float32) * 0.1

    s_out, v_out = model_driven_forward(params, Di, s, v, Btx, BtB,
                                        matrix_dtype=jnp.float32)
    jax.block_until_ready((s_out, v_out))
    s_ref, v_ref = model_driven_ref(params, Di, s, v, Btx, BtB)
    assert s_out.shape == (B, N, 1) and v_out.shape == (B, N, 1)
    assert jnp.allclose(s_out, s_ref, atol=1e-5, rtol=1e-5)
    assert jnp.allclose(v_out, v_ref, atol=1e-5, rtol=1e-5)

    # --- case 2: default bf16 matrices, 2D vector blocks, multi row/chunk ----
    B2, N2 = 16, 256
    kd2, ks2, kv2, kx2, kb2 = jax.random.split(jax.random.PRNGKey(1), 5)
    Di2 = jax.random.normal(kd2, (B2, N2, N2), dtype=jnp.float32) * 0.05
    s2_in = jax.random.normal(ks2, (B2, N2, 1), dtype=jnp.float32)
    v2_in = jax.random.normal(kv2, (B2, N2, 1), dtype=jnp.float32)
    Btx2_in = jax.random.normal(kx2, (B2, N2, 1), dtype=jnp.float32)
    BtB2 = jax.random.normal(kb2, (B2, N2, N2), dtype=jnp.float32) * 0.05

    s_out2, v_out2 = model_driven_forward(params, Di2, s2_in, v2_in, Btx2_in, BtB2)
    jax.block_until_ready((s_out2, v_out2))
    # Reference fed the same bf16-quantised matrices (f32 accumulation in both),
    # so the comparison only sees summation-order differences.
    Di2_q = Di2.astype(jnp.bfloat16).astype(jnp.float32)
    BtB2_q = BtB2.astype(jnp.bfloat16).astype(jnp.float32)
    s_ref2, v_ref2 = model_driven_ref(params, Di2_q, s2_in, v2_in, Btx2_in, BtB2_q)
    assert jnp.allclose(s_out2, s_ref2, atol=1e-3, rtol=1e-3)
    assert jnp.allclose(v_out2, v_ref2, atol=1e-3, rtol=1e-3)

    print("KERNEL_OK")
</pallas_src>

<mosaic_0001>
module attributes {stable_mosaic.version = 11 : i64} {
  func.func @model_driven_kernel(%arg0: i32, %arg1: memref<24xf32, #tpu.memory_space<smem>>, %arg2: memref<1x8x8xf32, #tpu.memory_space<vmem>>, %arg3: memref<1x1x8xf32, #tpu.memory_space<vmem>>, %arg4: memref<1x1x8xf32, #tpu.memory_space<vmem>>, %arg5: memref<1x1x8xf32, #tpu.memory_space<vmem>>, %arg6: memref<1x8x8xf32, #tpu.memory_space<vmem>>, %arg7: memref<1x1x8xf32, #tpu.memory_space<vmem>>, %arg8: memref<1x1x8xf32, #tpu.memory_space<vmem>>) attributes {dimension_semantics = [#tpu.dimension_semantics<parallel>], iteration_bounds = array<i64: 2>, scalar_prefetch = 1 : i64, scratch_operands = 0 : i64, tpu.core_type = #tpu.core_type<tc>, window_params = [{transform_indices = @transform_0, window_bounds = array<i64: 1, 8, 8>}, {transform_indices = @transform_1, window_bounds = array<i64: 1, 1, 8>}, {transform_indices = @transform_2, window_bounds = array<i64: 1, 1, 8>}, {transform_indices = @transform_3, window_bounds = array<i64: 1, 1, 8>}, {transform_indices = @transform_4, window_bounds = array<i64: 1, 8, 8>}, {transform_indices = @transform_5, window_bounds = array<i64: 1, 1, 8>}, {transform_indices = @transform_6, window_bounds = array<i64: 1, 1, 8>}]} {
    %c0 = arith.constant 0 : index
    %0 = memref.load %arg1[%c0] : memref<24xf32, #tpu.memory_space<smem>>
    %c1 = arith.constant 1 : index
    %1 = memref.load %arg1[%c1] : memref<24xf32, #tpu.memory_space<smem>>
    %c2 = arith.constant 2 : index
    %2 = memref.load %arg1[%c2] : memref<24xf32, #tpu.memory_space<smem>>
    %c3 = arith.constant 3 : index
    %3 = memref.load %arg1[%c3] : memref<24xf32, #tpu.memory_space<smem>>
    %c4 = arith.constant 4 : index
    %4 = memref.load %arg1[%c4] : memref<24xf32, #tpu.memory_space<smem>>
    %c5 = arith.constant 5 : index
    %5 = memref.load %arg1[%c5] : memref<24xf32, #tpu.memory_space<smem>>
    %c6 = arith.constant 6 : index
    %6 = memref.load %arg1[%c6] : memref<24xf32, #tpu.memory_space<smem>>
    %c7 = arith.constant 7 : index
    %7 = memref.load %arg1[%c7] : memref<24xf32, #tpu.memory_space<smem>>
    %c8 = arith.constant 8 : index
    %8 = memref.load %arg1[%c8] : memref<24xf32, #tpu.memory_space<smem>>
    %c9 = arith.constant 9 : index
    %9 = memref.load %arg1[%c9] : memref<24xf32, #tpu.memory_space<smem>>
    %c10 = arith.constant 10 : index
    %10 = memref.load %arg1[%c10] : memref<24xf32, #tpu.memory_space<smem>>
    %c11 = arith.constant 11 : index
    %11 = memref.load %arg1[%c11] : memref<24xf32, #tpu.memory_space<smem>>
    %c12 = arith.constant 12 : index
    %12 = memref.load %arg1[%c12] : memref<24xf32, #tpu.memory_space<smem>>
    %c13 = arith.constant 13 : index
    %13 = memref.load %arg1[%c13] : memref<24xf32, #tpu.memory_space<smem>>
    %c14 = arith.constant 14 : index
    %14 = memref.load %arg1[%c14] : memref<24xf32, #tpu.memory_space<smem>>
    %c15 = arith.constant 15 : index
    %15 = memref.load %arg1[%c15] : memref<24xf32, #tpu.memory_space<smem>>
    %c16 = arith.constant 16 : index
    %16 = memref.load %arg1[%c16] : memref<24xf32, #tpu.memory_space<smem>>
    %c17 = arith.constant 17 : index
    %17 = memref.load %arg1[%c17] : memref<24xf32, #tpu.memory_space<smem>>
    %c18 = arith.constant 18 : index
    %18 = memref.load %arg1[%c18] : memref<24xf32, #tpu.memory_space<smem>>
    %c19 = arith.constant 19 : index
    %19 = memref.load %arg1[%c19] : memref<24xf32, #tpu.memory_space<smem>>
    %c20 = arith.constant 20 : index
    %20 = memref.load %arg1[%c20] : memref<24xf32, #tpu.memory_space<smem>>
    %c21 = arith.constant 21 : index
    %21 = memref.load %arg1[%c21] : memref<24xf32, #tpu.memory_space<smem>>
    %c22 = arith.constant 22 : index
    %22 = memref.load %arg1[%c22] : memref<24xf32, #tpu.memory_space<smem>>
    %c23 = arith.constant 23 : index
    %23 = memref.load %arg1[%c23] : memref<24xf32, #tpu.memory_space<smem>>
    %c0_0 = arith.constant 0 : index
    %c0_1 = arith.constant 0 : index
    %c0_2 = arith.constant 0 : index
    %24 = vector.load %arg3[%c0_0, %c0_1, %c0_2] : memref<1x1x8xf32, #tpu.memory_space<vmem>>, vector<1x1x8xf32>
    %25 = vector.shape_cast %24 : vector<1x1x8xf32> to vector<1x8xf32>
    %c0_3 = arith.constant 0 : index
    %c0_4 = arith.constant 0 : index
    %c0_5 = arith.constant 0 : index
    %26 = vector.load %arg4[%c0_3, %c0_4, %c0_5] : memref<1x1x8xf32, #tpu.memory_space<vmem>>, vector<1x1x8xf32>
    %27 = vector.shape_cast %26 : vector<1x1x8xf32> to vector<1x8xf32>
    %c0_6 = arith.constant 0 : index
    %c0_7 = arith.constant 0 : index
    %c0_8 = arith.constant 0 : index
    %28 = vector.load %arg5[%c0_6, %c0_7, %c0_8] : memref<1x1x8xf32, #tpu.memory_space<vmem>>, vector<1x1x8xf32>
    %29 = vector.shape_cast %28 : vector<1x1x8xf32> to vector<1x8xf32>
    %30 = vector.broadcast %0 : f32 to vector<1x8xf32>
    %31 = arith.mulf %27, %30 : vector<1x8xf32>
    %32 = vector.broadcast %8 : f32 to vector<1x8xf32>
    %33 = arith.addf %31, %32 : vector<1x8xf32>
    %34 = vector.broadcast %1 : f32 to vector<1x8xf32>
    %35 = arith.mulf %33, %34 : vector<1x8xf32>
    %36 = vector.broadcast %9 : f32 to vector<1x8xf32>
    %37 = arith.addf %35, %36 : vector<1x8xf32>
    %38 = vector.shape_cast %25 : vector<1x8xf32> to vector<1x1x8xf32>
    %c0_9 = arith.constant 0 : index
    %c0_10 = arith.constant 0 : index
    %c0_11 = arith.constant 0 : index
    %39 = vector.load %arg6[%c0_9, %c0_10, %c0_11] : memref<1x8x8xf32, #tpu.memory_space<vmem>>, vector<1x8x8xf32>
    %40 = vector.broadcast %38 : vector<1x1x8xf32> to vector<1x8x8xf32>
    %41 = arith.mulf %39, %40 : vector<1x8x8xf32>
    %cst = arith.constant dense<0.000000e+00> : vector<1x8xf32>
    %42 = vector.multi_reduction <add>, %41, %cst [2] : vector<1x8x8xf32> to vector<1x8xf32>
    %43 = arith.subf %29, %42 : vector<1x8xf32>
    %44 = vector.shape_cast %43 : vector<1x8xf32> to vector<1x1x8xf32>
    %c0_12 = arith.constant 0 : index
    %c0_13 = arith.constant 0 : index
    %c0_14 = arith.constant 0 : index
    %45 = vector.load %arg2[%c0_12, %c0_13, %c0_14] : memref<1x8x8xf32, #tpu.memory_space<vmem>>, vector<1x8x8xf32>
    %46 = vector.broadcast %44 : vector<1x1x8xf32> to vector<1x8x8xf32>
    %47 = arith.mulf %45, %46 : vector<1x8x8xf32>
    %cst_15 = arith.constant dense<0.000000e+00> : vector<1x8xf32>
    %48 = vector.multi_reduction <add>, %47, %cst_15 [2] : vector<1x8x8xf32> to vector<1x8xf32>
    %49 = arith.addf %25, %48 : vector<1x8xf32>
    %50 = vector.broadcast %16 : f32 to vector<1x8xf32>
    %51 = arith.mulf %50, %37 : vector<1x8xf32>
    %52 = arith.addf %49, %51 : vector<1x8xf32>
    %cst_16 = arith.constant 1.000000e+00 : f32
    %53 = arith.subf %cst_16, %20 : f32
    %54 = vector.broadcast %53 : f32 to vector<1x8xf32>
    %55 = arith.mulf %54, %52 : vector<1x8xf32>
    %56 = vector.broadcast %20 : f32 to vector<1x8xf32>
    %57 = arith.mulf %56, %25 : vector<1x8xf32>
    %58 = arith.addf %55, %57 : vector<1x8xf32>
    %59 = math.tanh %58 : vector<1x8xf32>
    %60 = vector.broadcast %2 : f32 to vector<1x8xf32>
    %61 = arith.mulf %48, %60 : vector<1x8xf32>
    %62 = vector.broadcast %10 : f32 to vector<1x8xf32>
    %63 = arith.addf %61, %62 : vector<1x8xf32>
    %64 = vector.broadcast %3 : f32 to vector<1x8xf32>
    %65 = arith.mulf %63, %64 : vector<1x8xf32>
    %66 = vector.broadcast %11 : f32 to vector<1x8xf32>
    %67 = arith.addf %65, %66 : vector<1x8xf32>
    %68 = vector.shape_cast %59 : vector<1x8xf32> to vector<1x1x8xf32>
    %c0_17 = arith.constant 0 : index
    %c0_18 = arith.constant 0 : index
    %c0_19 = arith.constant 0 : index
    %69 = vector.load %arg6[%c0_17, %c0_18, %c0_19] : memref<1x8x8xf32, #tpu.memory_space<vmem>>, vector<1x8x8xf32>
    %70 = vector.broadcast %68 : vector<1x1x8xf32> to vector<1x8x8xf32>
    %71 = arith.mulf %69, %70 : vector<1x8x8xf32>
    %cst_20 = arith.constant dense<0.000000e+00> : vector<1x8xf32>
    %72 = vector.multi_reduction <add>, %71, %cst_20 [2] : vector<1x8x8xf32> to vector<1x8xf32>
    %73 = arith.subf %29, %72 : vector<1x8xf32>
    %74 = vector.shape_cast %73 : vector<1x8xf32> to vector<1x1x8xf32>
    %c0_21 = arith.constant 0 : index
    %c0_22 = arith.constant 0 : index
    %c0_23 = arith.constant 0 : index
    %75 = vector.load %arg2[%c0_21, %c0_22, %c0_23] : memref<1x8x8xf32, #tpu.memory_space<vmem>>, vector<1x8x8xf32>
    %76 = vector.broadcast %74 : vector<1x1x8xf32> to vector<1x8x8xf32>
    %77 = arith.mulf %75, %76 : vector<1x8x8xf32>
    %cst_24 = arith.constant dense<0.000000e+00> : vector<1x8xf32>
    %78 = vector.multi_reduction <add>, %77, %cst_24 [2] : vector<1x8x8xf32> to vector<1x8xf32>
    %79 = arith.addf %59, %78 : vector<1x8xf32>
    %80 = vector.broadcast %17 : f32 to vector<1x8xf32>
    %81 = arith.mulf %80, %67 : vector<1x8xf32>
    %82 = arith.addf %79, %81 : vector<1x8xf32>
    %cst_25 = arith.constant 1.000000e+00 : f32
    %83 = arith.subf %cst_25, %21 : f32
    %84 = vector.broadcast %83 : f32 to vector<1x8xf32>
    %85 = arith.mulf %84, %82 : vector<1x8xf32>
    %86 = vector.broadcast %21 : f32 to vector<1x8xf32>
    %87 = arith.mulf %86, %59 : vector<1x8xf32>
    %88 = arith.addf %85, %87 : vector<1x8xf32>
    %89 = math.tanh %88 : vector<1x8xf32>
    %90 = vector.broadcast %4 : f32 to vector<1x8xf32>
    %91 = arith.mulf %78, %90 : vector<1x8xf32>
    %92 = vector.broadcast %12 : f32 to vector<1x8xf32>
    %93 = arith.addf %91, %92 : vector<1x8xf32>
    %94 = vector.broadcast %5 : f32 to vector<1x8xf32>
    %95 = arith.mulf %93, %94 : vector<1x8xf32>
    %96 = vector.broadcast %13 : f32 to vector<1x8xf32>
    %97 = arith.addf %95, %96 : vector<1x8xf32>
    %98 = vector.shape_cast %89 : vector<1x8xf32> to vector<1x1x8xf32>
    %c0_26 = arith.constant 0 : index
    %c0_27 = arith.constant 0 : index
    %c0_28 = arith.constant 0 : index
    %99 = vector.load %arg6[%c0_26, %c0_27, %c0_28] : memref<1x8x8xf32, #tpu.memory_space<vmem>>, vector<1x8x8xf32>
    %100 = vector.broadcast %98 : vector<1x1x8xf32> to vector<1x8x8xf32>
    %101 = arith.mulf %99, %100 : vector<1x8x8xf32>
    %cst_29 = arith.constant dense<0.000000e+00> : vector<1x8xf32>
    %102 = vector.multi_reduction <add>, %101, %cst_29 [2] : vector<1x8x8xf32> to vector<1x8xf32>
    %103 = arith.subf %29, %102 : vector<1x8xf32>
    %104 = vector.shape_cast %103 : vector<1x8xf32> to vector<1x1x8xf32>
    %c0_30 = arith.constant 0 : index
    %c0_31 = arith.constant 0 : index
    %c0_32 = arith.constant 0 : index
    %105 = vector.load %arg2[%c0_30, %c0_31, %c0_32] : memref<1x8x8xf32, #tpu.memory_space<vmem>>, vector<1x8x8xf32>
    %106 = vector.broadcast %104 : vector<1x1x8xf32> to vector<1x8x8xf32>
    %107 = arith.mulf %105, %106 : vector<1x8x8xf32>
    %cst_33 = arith.constant dense<0.000000e+00> : vector<1x8xf32>
    %108 = vector.multi_reduction <add>, %107, %cst_33 [2] : vector<1x8x8xf32> to vector<1x8xf32>
    %109 = arith.addf %89, %108 : vector<1x8xf32>
    %110 = vector.broadcast %18 : f32 to vector<1x8xf32>
    %111 = arith.mulf %110, %97 : vector<1x8xf32>
    %112 = arith.addf %109, %111 : vector<1x8xf32>
    %cst_34 = arith.constant 1.000000e+00 : f32
    %113 = arith.subf %cst_34, %22 : f32
    %114 = vector.broadcast %113 : f32 to vector<1x8xf32>
    %115 = arith.mulf %114, %112 : vector<1x8xf32>
    %116 = vector.broadcast %22 : f32 to vector<1x8xf32>
    %117 = arith.mulf %116, %89 : vector<1x8xf32>
    %118 = arith.addf %115, %117 : vector<1x8xf32>
    %119 = math.tanh %118 : vector<1x8xf32>
    %120 = vector.broadcast %6 : f32 to vector<1x8xf32>
    %121 = arith.mulf %108, %120 : vector<1x8xf32>
    %122 = vector.broadcast %14 : f32 to vector<1x8xf32>
    %123 = arith.addf %121, %122 : vector<1x8xf32>
    %124 = vector.broadcast %7 : f32 to vector<1x8xf32>
    %125 = arith.mulf %123, %124 : vector<1x8xf32>
    %126 = vector.broadcast %15 : f32 to vector<1x8xf32>
    %127 = arith.addf %125, %126 : vector<1x8xf32>
    %128 = vector.shape_cast %119 : vector<1x8xf32> to vector<1x1x8xf32>
    %c0_35 = arith.constant 0 : index
    %c0_36 = arith.constant 0 : index
    %c0_37 = arith.constant 0 : index
    %129 = vector.load %arg6[%c0_35, %c0_36, %c0_37] : memref<1x8x8xf32, #tpu.memory_space<vmem>>, vector<1x8x8xf32>
    %130 = vector.broadcast %128 : vector<1x1x8xf32> to vector<1x8x8xf32>
    %131 = arith.mulf %129, %130 : vector<1x8x8xf32>
    %cst_38 = arith.constant dense<0.000000e+00> : vector<1x8xf32>
    %132 = vector.multi_reduction <add>, %131, %cst_38 [2] : vector<1x8x8xf32> to vector<1x8xf32>
    %133 = arith.subf %29, %132 : vector<1x8xf32>
    %134 = vector.shape_cast %133 : vector<1x8xf32> to vector<1x1x8xf32>
    %c0_39 = arith.constant 0 : index
    %c0_40 = arith.constant 0 : index
    %c0_41 = arith.constant 0 : index
    %135 = vector.load %arg2[%c0_39, %c0_40, %c0_41] : memref<1x8x8xf32, #tpu.memory_space<vmem>>, vector<1x8x8xf32>
    %136 = vector.broadcast %134 : vector<1x1x8xf32> to vector<1x8x8xf32>
    %137 = arith.mulf %135, %136 : vector<1x8x8xf32>
    %cst_42 = arith.constant dense<0.000000e+00> : vector<1x8xf32>
    %138 = vector.multi_reduction <add>, %137, %cst_42 [2] : vector<1x8x8xf32> to vector<1x8xf32>
    %139 = arith.addf %119, %138 : vector<1x8xf32>
    %140 = vector.broadcast %19 : f32 to vector<1x8xf32>
    %141 = arith.mulf %140, %127 : vector<1x8xf32>
    %142 = arith.addf %139, %141 : vector<1x8xf32>
    %cst_43 = arith.constant 1.000000e+00 : f32
    %143 = arith.subf %cst_43, %23 : f32
    %144 = vector.broadcast %143 : f32 to vector<1x8xf32>
    %145 = arith.mulf %144, %142 : vector<1x8xf32>
    %146 = vector.broadcast %23 : f32 to vector<1x8xf32>
    %147 = arith.mulf %146, %119 : vector<1x8xf32>
    %148 = arith.addf %145, %147 : vector<1x8xf32>
    %149 = vector.shape_cast %148 : vector<1x8xf32> to vector<1x1x8xf32>
    %c0_44 = arith.constant 0 : index
    %c0_45 = arith.constant 0 : index
    %c0_46 = arith.constant 0 : index
    %150 = vector.load %arg7[%c0_44, %c0_45, %c0_46] : memref<1x1x8xf32, #tpu.memory_space<vmem>>, vector<1x1x8xf32>
    tpu.vector_store %arg7[%c0_44, %c0_45, %c0_46], %149 {strides = array<i32>} : memref<1x1x8xf32, #tpu.memory_space<vmem>>, vector<1x1x8xf32>,
    %151 = vector.shape_cast %138 : vector<1x8xf32> to vector<1x1x8xf32>
    %c0_47 = arith.constant 0 : index
    %c0_48 = arith.constant 0 : index
    %c0_49 = arith.constant 0 : index
    %152 = vector.load %arg8[%c0_47, %c0_48, %c0_49] : memref<1x1x8xf32, #tpu.memory_space<vmem>>, vector<1x1x8xf32>
    tpu.vector_store %arg8[%c0_47, %c0_48, %c0_49], %151 {strides = array<i32>} : memref<1x1x8xf32, #tpu.memory_space<vmem>>, vector<1x1x8xf32>,
    return
  }
  func.func @transform_0(%arg0: i32, %arg1: memref<24xf32, #tpu.memory_space<smem>>) -> (i32, i32, i32) {
    %c0_i32 = arith.constant 0 : i32
    %c0_i32_0 = arith.constant 0 : i32
    %c0_i32_1 = arith.constant 0 : i32
    return %arg0, %c0_i32, %c0_i32_0 : i32, i32, i32
  }
  func.func @transform_1(%arg0: i32, %arg1: memref<24xf32, #tpu.memory_space<smem>>) -> (i32, i32, i32) {
    %c0_i32 = arith.constant 0 : i32
    %c0_i32_0 = arith.constant 0 : i32
    %c0_i32_1 = arith.constant 0 : i32
    return %arg0, %c0_i32, %c0_i32_0 : i32, i32, i32
  }
  func.func @transform_2(%arg0: i32, %arg1: memref<24xf32, #tpu.memory_space<smem>>) -> (i32, i32, i32) {
    %c0_i32 = arith.constant 0 : i32
    %c0_i32_0 = arith.constant 0 : i32
    %c0_i32_1 = arith.constant 0 : i32
    return %arg0, %c0_i32, %c0_i32_0 : i32, i32, i32
  }
  func.func @transform_3(%arg0: i32, %arg1: memref<24xf32, #tpu.memory_space<smem>>) -> (i32, i32, i32) {
    %c0_i32 = arith.constant 0 : i32
    %c0_i32_0 = arith.constant 0 : i32
    %c0_i32_1 = arith.constant 0 : i32
    return %arg0, %c0_i32, %c0_i32_0 : i32, i32, i32
  }
  func.func @transform_4(%arg0: i32, %arg1: memref<24xf32, #tpu.memory_space<smem>>) -> (i32, i32, i32) {
    %c0_i32 = arith.constant 0 : i32
    %c0_i32_0 = arith.constant 0 : i32
    %c0_i32_1 = arith.constant 0 : i32
    return %arg0, %c0_i32, %c0_i32_0 : i32, i32, i32
  }
  func.func @transform_5(%arg0: i32, %arg1: memref<24xf32, #tpu.memory_space<smem>>) -> (i32, i32, i32) {
    %c0_i32 = arith.constant 0 : i32
    %c0_i32_0 = arith.constant 0 : i32
    %c0_i32_1 = arith.constant 0 : i32
    return %arg0, %c0_i32, %c0_i32_0 : i32, i32, i32
  }
  func.func @transform_6(%arg0: i32, %arg1: memref<24xf32, #tpu.memory_space<smem>>) -> (i32, i32, i32) {
    %c0_i32 = arith.constant 0 : i32
    %c0_i32_0 = arith.constant 0 : i32
    %c0_i32_1 = arith.constant 0 : i32
    return %arg0, %c0_i32, %c0_i32_0 : i32, i32, i32
  }
}

</mosaic_0001>

<bundles_post_ra>
// kernel: tpu_custom_call.1
= control target key start
LH: loop header
LB: loop body
LE: loop exit
PB: predicated region body
PF: predicated region fallthrough
CT: control target
= control target key end

     0   :  { %s1455_s27 = smov [#allocation3]   ;;  %s1825_s0 = inlined_call_operand.vmem [shape: f32[24], index: 0, kind: input, shape index: {}]   ;;  %s1826_s1 = inlined_call_operand.hbm [shape: f32[2,8,8], index: 1, kind: input, shape index: {}]   ;;  %s1827_s2 = inlined_call_operand.hbm [shape: f32[2,1,8], index: 2, kind: input, shape index: {}, may-alias: {2,6}]   ;;  %s1828_s3 = inlined_call_operand.hbm [shape: f32[2,1,8], index: 3, kind: input, shape index: {}, may-alias: {3,7}]   ;;  %s1829_s4 = inlined_call_operand.vmem [shape: f32[2,1,8], index: 4, kind: input, shape index: {}]   ;;  %s1830_s5 = inlined_call_operand.hbm [shape: f32[2,8,8], index: 5, kind: input, shape index: {}]   ;;  %s1831_s6 = inlined_call_operand.hbm [shape: f32[2,1,8], index: 6, kind: output, shape index: {0}, may-alias: {2,6}]   ;;  %s1832_s7 = inlined_call_operand.hbm [shape: f32[2,1,8], index: 7, kind: output, shape index: {1}, may-alias: {3,7}]  }
   0x1   :  { %1838 = sst [smem:[#allocation24_spill]] %s1827_s2  ;;  %s14_s26 = sshll.u32 %s1825_s0, 4  ;;  %s15_s26 = int_to_ptr.vmem [resolvable:$true] %s14_s26 }
   0x2   :  { %17 = dma.vmem_to_smem %s15_s26, 16, %s1455_s27, [#allocation2] }
   0x3   :  { %1417 = dma.done.wait [#allocation2], 16 }
   0x4   :  { %1418 = vsyncadd [#allocation2], 4294967280 }
   0x5   :  { %20 = sfence }
   0x6   :  { %21 = vsyncpa [#allocation5], 0 }
   0x7   :  { %23 = vsyncpa [#allocation5 + $0x1], 0 }
   0x8   :  { %24 = vsyncpa [#allocation8], 0 }
   0x9   :  { %26 = vsyncpa [#allocation8 + $0x1], 0 }
   0xa   :  { %27 = vsyncpa [#allocation11], 0 }
   0xb   :  { %29 = vsyncpa [#allocation11 + $0x1], 0 }
   0xc   :  { %30 = vsyncpa [#allocation6], 0 }
   0xd   :  { %32 = vsyncpa [#allocation6 + $0x1], 0 }
   0xe   :  { %33 = vsyncpa [#allocation14], 0 }
   0xf   :  { %35 = vsyncpa [#allocation14 + $0x1], 0  ;;  %s1500_s28 = smov 0   ;;  %s1502_s29 = smov 0  }
  0x10   :  { %s1504_s0 = smov 0   ;;  %s1506_s30 = smov 0  }
  0x11 LB: > { %1839 = sst [smem:[#allocation21_spill]] %s1449_s0  ;;  %s1521_s8 = sadd.s32 4294967295, %s1453_s30   ;;  %s1453_s30 = sphi %s1506_s30, %s1850_s30   ;;  %s1449_s0 = sphi %s1504_s0, %s1852_s0   ;;  %s1445_s29 = sphi %s1502_s29, %s1854_s29   ;;  %s1441_s28 = sphi %s1500_s28, %s1853_s28  }
  0x12   : > { %s1100_s9 = sadd.s32 4294967294, %s1453_s30   ;;  %s1525_s10 = sadd.s32 1, %s1453_s30  }
  0x13   : > { %1840 = sst [smem:[#allocation22_spill]] %s1525_s10  ;;  %s48_s11 = sadd.s32 1, %s1449_s0 }
  0x14   : > { %s45_s12 = ssub.s32 %s1453_s30, %s1525_s10  ;;  %p55_p0 = scmp.ne.s32.totalorder %s1449_s0, %s1445_s29 }
  0x15   : > { %p46_p1 = scmp.eq.s32.totalorder %s45_s12, 0  ;;  %p56_p2 = scmp.eq.s32.totalorder %s1453_s30, 0 }
  0x16   : > { %p61_p3 = scmp.ne.s32.totalorder %s1445_s29, %s1441_s28  ;;  %p62_p4 = scmp.eq.s32.totalorder %s1521_s8, 0 }
  0x17   : > { %s1537_s13 = scalar_select %p46_p1, %s1449_s0, %s48_s11  }
  0x18   : > { %p57_p5 = por %p56_p2, %p55_p0  ;;  %p1539_p6 = por %p62_p4, %p61_p3 }
  0x19   : > { %1841 = sst [smem:[#allocation23_spill]] %s1537_s13  ;;  %p189_p7 = scmp.eq.s32.totalorder %s1521_s8, 1 }
  0x1a   : > { %p195_p8 = scmp.eq.s32.totalorder %s1100_s9, 1  ;;  %p1102_p9 = scmp.ge.s32.totalorder %s1453_s30, 2 }
  0x1b   : > { %p1167_p10 = scmp.lt.s32.totalorder %s1453_s30, 2  ;;  %p1546_p11 = por %p189_p7, %p55_p0 }
  0x1c   : > { %p1550_p12 = por %p195_p8, %p61_p3  ;;  %s1555_s17 = sand.u32 1, %s1449_s0  }
  0x1d   : > { %p1557_p13 = pnand %p1167_p10, %p57_p5  ;;  %s260_s19 = sand.u32 1, %s1453_s30  }
  0x1e   : > { %s1846_s2 = sld [smem:[#allocation24_spill]]  ;;  %s263_s23 = scalar_lea.vmem [#allocation7], %s1555_s17 }
  0x1f   : > { %s270_s24 = sshll.u32 %s263_s23, 4  ;;  %p1107_p0 = scmp.ge.s32.totalorder %s1453_s30, 1  ;;  %s271_s24 = int_to_ptr.vmem [resolvable:$true] %s270_s24 }
  0x20   : > { %s1568_s26 = scalar_lea.sflag [#allocation8], %s260_s19  ;;  %p1229_p2 = pneg %p1557_p13 }
  0x24   : > { %s266_s22 = scalar_lea.hbm %s1846_s2, %s1453_s30  ;;  %s1232_s20 = scalar_lea.hbm %s1846_s2, 2 }
  0x25   : > { %s268_s25 = sshll.u32 %s266_s22, 4  ;;  %s269_s25 = int_to_ptr.hbm [resolvable:$true] %s268_s25 }
  0x26   : > { %s1225_s27 = sshra.s32 %s269_s25, 4  ;;  %s1226_s27 = int_to_ptr.hbm [resolvable:$true] %s1225_s27 }
  0x27   : > { %s1227_s9 = scalar_lea.hbm %s1226_s27, 1  ;;  %p1233_p5 = scmp.lt.s32.totalorder %s1226_s27, %s1846_s2 }
  0x28   : > { %p1228_p1 = scmp.ne.s32.totalorder %s1226_s27, %s1227_s9  ;;  %p1234_p7 = scmp.lt.s32.totalorder %s1232_s20, %s1227_s9 }
  0x2a   : > { %p1230_p3 = pnand %p1229_p2, %p1228_p1  ;;  %p1235_p8 = por %p1234_p7, %p1233_p5 }
  0x2c   : > { %p1231_p4 = pneg %p1230_p3 }
  0x2e   : > { %p1236_p10 = pnand %p1235_p8, %p1231_p4 }
  0x30   : > { %1239 = shalt.err (!%p1236_p10)
}
  0x31   : > { %1153 = dma.hbm_to_vmem [thread:$0]  (!%p1557_p13), %s269_s25, 16, %s271_s24, %s1568_s26  }
  0x32   : > { %p317_p1 = scmp.lt.s32.totalorder %s1453_s30, 3  ;;  %s1835_s19 = sshll.u32 %s1555_s17, 3 }
  0x33   : > { %s1834_s23 = sshll.u32 %s1453_s30, 3  ;;  %s245_s20 = scalar_lea.vmem [#allocation4], %s1835_s19 }
  0x34   : > { %p1589_p3 = pnand %p1107_p0, %p317_p1  ;;  %s249_s12 = scalar_lea.hbm %s1826_s1, %s1834_s23 }
  0x35   : > { %s253_s21 = sshll.u32 %s245_s20, 4  ;;  %s251_s22 = sshll.u32 %s249_s12, 4  ;;  %s254_s21 = int_to_ptr.vmem [resolvable:$true] %s253_s21  ;;  %s252_s22 = int_to_ptr.hbm [resolvable:$true] %s251_s22 }
  0x36   : > { %s242_s24 = scalar_lea.sflag [#allocation5], %s1555_s17  ;;  %s1255_s25 = sshra.s32 %s252_s22, 4  ;;  %s1256_s25 = int_to_ptr.hbm [resolvable:$true] %s1255_s25 }
  0x37   : > { %s1257_s2 = scalar_lea.hbm %s1256_s25, 8  ;;  %s1262_s9 = scalar_lea.hbm %s1826_s1, 16 }
  0x38   : > { %p1258_p4 = scmp.ne.s32.totalorder %s1256_s25, %s1257_s2  ;;  %p1263_p7 = scmp.lt.s32.totalorder %s1256_s25, %s1826_s1 }
  0x39   : > { %p1264_p8 = scmp.lt.s32.totalorder %s1262_s9, %s1257_s2 }
  0x3a   : > { %p1260_p0 = pnand %p1258_p4, %p1229_p2 }
  0x3b   : > { %p1265_p10 = por %p1264_p8, %p1263_p7 }
  0x3c   : > { %p1261_p5 = pneg %p1260_p0 }
  0x3e   : > { %p1266_p1 = pnand %p1265_p10, %p1261_p5 }
  0x40   : > { %1269 = shalt.err (!%p1266_p1)
}
  0x41   : > { %1150 = dma.hbm_to_vmem [thread:$0]  (!%p1557_p13), %s252_s22, 128, %s254_s21, %s242_s24  }
  0x42   : > { %s283_s19 = scalar_lea.hbm %s1828_s3, %s1453_s30  ;;  %s280_s0 = scalar_lea.vmem [#allocation9], %s1555_s17 }
  0x43   : > { %s287_s13 = sshll.u32 %s280_s0, 4  ;;  %s285_s10 = sshll.u32 %s283_s19, 4  ;;  %s288_s13 = int_to_ptr.vmem [resolvable:$true] %s287_s13  ;;  %s286_s10 = int_to_ptr.hbm [resolvable:$true] %s285_s10 }
  0x44   : > { %s1285_s23 = sshra.s32 %s286_s10, 4  ;;  %s1292_s21 = scalar_lea.hbm %s1828_s3, 2  ;;  %s1286_s23 = int_to_ptr.hbm [resolvable:$true] %s1285_s23 }
  0x45   : > { %s1287_s2 = scalar_lea.hbm %s1286_s23, 1  ;;  %p1293_p7 = scmp.lt.s32.totalorder %s1286_s23, %s1828_s3 }
  0x46   : > { %p1288_p4 = scmp.ne.s32.totalorder %s1286_s23, %s1287_s2  ;;  %p1294_p8 = scmp.lt.s32.totalorder %s1292_s21, %s1287_s2 }
  0x48   : > { %p1290_p0 = pnand %p1288_p4, %p1229_p2  ;;  %p1295_p10 = por %p1294_p8, %p1293_p7 }
  0x4a   : > { %p1291_p5 = pneg %p1290_p0 }
  0x4c   : > { %p1296_p1 = pnand %p1295_p10, %p1291_p5 }
  0x4e   : > { %1299 = shalt.err (!%p1296_p1)
}
  0x4f   : > { %1156 = dma.hbm_to_vmem [thread:$0]  (!%p1557_p13), %s286_s10, 16, %s288_s13, %s1568_s26  }
  0x50   : > { %s1848_s19 = sshll.u32 %s1453_s30, 3  ;;  %s1849_s25 = sshll.u32 %s1555_s17, 3 }
  0x51   : > { %s308_s20 = scalar_lea.hbm %s1830_s5, %s1848_s19  ;;  %s304_s23 = scalar_lea.vmem [#allocation10], %s1849_s25 }
  0x52   : > { %s310_s0 = sshll.u32 %s308_s20, 4  ;;  %s312_s2 = sshll.u32 %s304_s23, 4  ;;  %s311_s0 = int_to_ptr.hbm [resolvable:$true] %s310_s0  ;;  %s313_s2 = int_to_ptr.vmem [resolvable:$true] %s312_s2 }
  0x53   : > { %s301_s9 = scalar_lea.sflag [#allocation11], %s1555_s17  ;;  %s1315_s21 = sshra.s32 %s311_s0, 4  ;;  %s1316_s21 = int_to_ptr.hbm [resolvable:$true] %s1315_s21 }
  0x54   : > { %s1317_s22 = scalar_lea.hbm %s1316_s21, 8  ;;  %s1322_s13 = scalar_lea.hbm %s1830_s5, 16 }
  0x55   : > { %p1318_p4 = scmp.ne.s32.totalorder %s1316_s21, %s1317_s22  ;;  %p1323_p7 = scmp.lt.s32.totalorder %s1316_s21, %s1830_s5 }
  0x56   : > { %p1324_p8 = scmp.lt.s32.totalorder %s1322_s13, %s1317_s22 }
  0x57   : > { %p1320_p0 = pnand %p1318_p4, %p1229_p2 }
  0x58   : > { %p1325_p10 = por %p1324_p8, %p1323_p7 }
  0x59   : > { %p1321_p5 = pneg %p1320_p0 }
  0x5b   : > { %p1326_p1 = pnand %p1325_p10, %p1321_p5 }
  0x5d   : > { %1329 = shalt.err (!%p1326_p1)
}
  0x5e   : > { %1159 = dma.hbm_to_vmem [thread:$0]  (!%p1557_p13), %s311_s0, 128, %s313_s2, %s301_s9  }
  0x5f   : > { %321 = sbr.rel (%p1589_p3) target bundleno = 2226 (0x8b2), region = 40  ;;  %s1651_s17 = sand.u32 (!%p1589_p3), 1, %s1445_s29  }
  0x60   : > { %s1108_s11 = sshll.u32 (!%p1589_p3), %s1651_s17, 3  ;;  %s324_s12 = scalar_lea.sflag (!%p1589_p3), [#allocation5], %s1651_s17 }
  0x61   : > { %s1655_s20 = scalar_lea.vmem (!%p1589_p3), [#allocation4], %s1108_s11 }
  0x64   : > { %1420 = dma.done.wait (%p1539_p6), %s324_s12, 128  }
  0x65   : > { %1422 = vsyncadd (%p1539_p6), %s324_s12, 4294967168  ;;  %s333_s18 = sand.u32 1, %s1521_s8   ;;  %s336_s0 = scalar_lea.vmem [#allocation7], %s1651_s17 }
  0x66   : > { %s334_s27 = scalar_lea.sflag [#allocation8], %s333_s18 }
  0x67   : > { %1424 = dma.done.wait (%p1539_p6), %s334_s27, 32  }
  0x68   : > { %1426 = vsyncadd (%p1539_p6), %s334_s27, 4294967264  ;;  %s345_s25 = scalar_lea.vmem [#allocation9], %s1651_s17  ;;  %s352_s23 = scalar_lea.sflag [#allocation11], %s1651_s17 }
  0x69   : > { %s355_s2 = scalar_lea.vmem [#allocation10], %s1108_s11 }
  0x6a   : > { %1428 = dma.done.wait (%p1539_p6), %s352_s23, 128  }
  0x6b   : > { %1430 = vsyncadd (%p1539_p6), %s352_s23, 4294967168  ;;  %v1673_v0 = vld [vmem:[%s355_s2] sm:$0xff]  ;;  %vm447_vm0 = vcmask 64512   ;;  %v1456_v4 = vmov 0   ;;  %p404_p6 = scmp.lt.s32.totalorder %s1521_s8, 1  ;;  %v479_v15 = vlaneseq  ;;  %v1691_v21 = vld [vmem:[%s1655_s20] sm:$0xff] }
  0x6c   : > { %v1206_v1 = vld [vmem:[%s336_s0] ss:$0 sm:$0xff]  ;;  %1203 = vset.pattern.permute.xlu0 %v1456_v4  ;;  %1204 = vset.pattern.permute.xlu1 %v1456_v4  ;;  %s407_s10 = sld [smem:[#allocation3]]  ;;  %vm904_vm1 = vcmask 57344  }
  0x6d   : > { %v446_v2 = vmul.f32 %v1206_v1, %v1673_v0  ;;  %1205 = vset.pattern.permute.xlu2 %v1456_v4  ;;  %s405_s14 = scalar_select %p404_p6, %s1521_s8, 1  ;;  %v1684_v16 = vand.u32 127, %v479_v15  ;;  %v432_v35 = vld [vmem:[%s345_s25] sm:$0x1] }
  0x6e   : > { %s1117_s26 = sld [smem:[#allocation3 + $0x8]]  ;;  %v431_v45 = vld [vmem:[%s336_s0] sm:$0x1] }
  0x6f   : > { %v448_v3 = vsel %vm447_vm0, %v446_v2, 0.0  ;;  %s406_s22 = scalar_lea.vmem %s1829_s4, %s405_s14  ;;  %s1110_s13 = sld [smem:[#allocation3 + $0x1]] }
  0x70   : > { %449 = vadd.xlane.f32.xlu0 %v448_v3  ;;  %v1686_v17 = vld [vmem:[%s406_s22] sm:$0x1]  ;;  %s1118_s24 = sld [smem:[#allocation3 + $0x9]] }
  0x71   : > { %s1125_s19 = sld [smem:[#allocation3 + $0x10]] }
  0x72   : > { %v434_v36 = vstv %s407_s10  ;;  %s1129_s11 = sld [smem:[#allocation3 + $0x14]] }
  0x73   : > { %v435_v37 = vmul.f32 %v434_v36, %v432_v35  ;;  %s1111_s20 = sld [smem:[#allocation3 + $0x2]] }
  0x74   : > { %v436_v38 = vstv %s1117_s26  ;;  %s1119_s18 = sld [smem:[#allocation3 + $0xa]] }
  0x75   : > { %v437_v39 = vadd.f32 %v436_v38, %v435_v37  ;;  %v438_v40 = vstv %s1110_s13  ;;  %s1112_s27 = sld [smem:[#allocation3 + $0x3]] }
  0x76   : > { %v440_v42 = vstv %s1118_s24  ;;  %s1120_s0 = sld [smem:[#allocation3 + $0xb]] }
  0x77   : > { %v439_v41 = vmul.f32 %v438_v40, %v437_v39  ;;  %v523_v44 = vstv %s1125_s19  ;;  %s1126_s25 = sld [smem:[#allocation3 + $0x11]] }
  0x78   : > { %s526_s12 = ssub.f32 1.0, %s1129_s11  ;;  %v529_v49 = vstv %s1129_s11 }
  0x79   : > { %v441_v43 = vadd.f32 %v440_v42, %v439_v41  ;;  %v530_v52 = vmul.f32 %v529_v49, %v431_v45  ;;  %s1130_s23 = sld [smem:[#allocation3 + $0x15]] }
  0x7a   : > { %v527_v51 = vstv %s526_s12  ;;  %v535_v15 = vstv %s1119_s18  ;;  %s1113_s14 = sld [smem:[#allocation3 + $0x4]]  ;;  %s403_s18 = scalar_lea.vmem [#allocation13], %s1651_s17 }
  0x7b   : > { %v524_v48 = vmul.f32 %v523_v44, %v441_v43  ;;  %s1121_s9 = sld [smem:[#allocation3 + $0xc]] }
  0x7c   : > { %s1114_s21 = sld [smem:[#allocation3 + $0x5]] }
  0x7d   : > { %s1122_s22 = sld [smem:[#allocation3 + $0xd]] }
  0x7e   : > { %s1127_s10 = sld [smem:[#allocation3 + $0x12]] }
  0x7f   : > { %s650_s2 = ssub.f32 1.0, %s1130_s23 }
  0x80   : > { %s1131_s26 = sld [smem:[#allocation3 + $0x16]] }
  0x81   : > { %s1115_s24 = sld [smem:[#allocation3 + $0x6]] }
  0x82   : > { %s1123_s19 = sld [smem:[#allocation3 + $0xe]] }
  0x83   : > { %s1116_s11 = sld [smem:[#allocation3 + $0x7]] }
  0x84   : > { %s1124_s12 = sld [smem:[#allocation3 + $0xf]] }
  0x86   : > { %s774_s13 = ssub.f32 1.0, %s1131_s26 }
  0xe3   : > { %v450_v5 = vpop.xlane.xlu0 %449 }
  0xe4   : > { %v452_v6 = vperm.slane %v450_v5, 0  ;;  %v453_v7 = vperm.slane %v450_v5, 1  ;;  %v454_v8 = vperm.slane %v450_v5, 2  ;;  %v455_v9 = vperm.slane %v450_v5, 3 }
  0xe5   : > { %v456_v10 = vperm.slane %v450_v5, 4  ;;  %v457_v11 = vperm.slane %v450_v5, 5  ;;  %v458_v12 = vperm.slane %v450_v5, 6  ;;  %v459_v13 = vperm.slane %v450_v5, 7 }
  0xe6   : > { %460 = vst [vmem:[#allocation1] ss:$9 sm:$0xff] %v452_v6 }
  0xe7   : > { %462 = vst [vmem:[#allocation1 + $0x1] ss:$9 sm:$0xff] %v453_v7 }
  0xe8   : > { %464 = vst [vmem:[#allocation1 + $0x2] ss:$9 sm:$0xff] %v454_v8 }
  0xe9   : > { %466 = vst [vmem:[#allocation1 + $0x3] ss:$9 sm:$0xff] %v455_v9 }
  0xea   : > { %468 = vst [vmem:[#allocation1 + $0x4] ss:$9 sm:$0xff] %v456_v10 }
  0xeb   : > { %470 = vst [vmem:[#allocation1 + $0x5] ss:$9 sm:$0xff] %v457_v11 }
  0xec   : > { %472 = vst [vmem:[#allocation1 + $0x6] ss:$9 sm:$0xff] %v458_v12 }
  0xed   : > { %474 = vst [vmem:[#allocation1 + $0x7] ss:$9 sm:$0xff] %v459_v13  ;;  %v533_v13 = vstv %s1111_s20  ;;  %s1128_s20 = sld [smem:[#allocation3 + $0x13]] }
  0xf4   : > { %v475_v14 = vld [vmem:[#allocation1] sm:$0xff] }
  0xf5   : > { %477 = vperm.xlu0 %1203, %v475_v14  }
 0x167   : > { %v478_v18 = vpop.permute.xlu0 %477 }
 0x168   : > { %v481_v19 = vperm.slane %v478_v18, %v1684_v16 }
 0x16a   : > { %v483_v20 = vsub.f32 %v1686_v17, %v481_v19 }
 0x16c   : > { %v486_v22 = vperm.slane %v483_v20, 0  ;;  %v537_v20 = vstv %s1112_s27 }
 0x16e   : > { %v488_v23 = vmul.f32 %v486_v22, %v1691_v21 }
 0x170   : > { %v489_v24 = vsel %vm447_vm0, %v488_v23, 0.0 }
 0x171   : > { %490 = vadd.xlane.f32.xlu1 %v489_v24 }
 0x1e4   : > { %v1695_v25 = vpop.xlane.xlu1 %490 }
 0x1e5   : > { %v493_v26 = vperm.slane %v1695_v25, 0  ;;  %v494_v27 = vperm.slane %v1695_v25, 1  ;;  %v495_v28 = vperm.slane %v1695_v25, 2  ;;  %v496_v29 = vperm.slane %v1695_v25, 3 }
 0x1e6   : > { %v497_v30 = vperm.slane %v1695_v25, 4  ;;  %v498_v31 = vperm.slane %v1695_v25, 5  ;;  %v499_v32 = vperm.slane %v1695_v25, 6  ;;  %v500_v33 = vperm.slane %v1695_v25, 7 }
 0x1e7   : > { %501 = vst [vmem:[#allocation1] ss:$9 sm:$0xff] %v493_v26  ;;  %v534_v14 = vmul.f32 %v533_v13, %v1695_v25  ;;  %v657_v13 = vstv %s1113_s14  ;;  %s914_s14 = scalar_lea.sflag [#allocation14], %s1651_s17 }
 0x1e8   : > { %503 = vst [vmem:[#allocation1 + $0x1] ss:$9 sm:$0xff] %v494_v27 }
 0x1e9   : > { %505 = vst [vmem:[#allocation1 + $0x2] ss:$9 sm:$0xff] %v495_v28  ;;  %v536_v18 = vadd.f32 %v535_v15, %v534_v14  ;;  %v659_v15 = vstv %s1121_s9 }
 0x1ea   : > { %507 = vst [vmem:[#allocation1 + $0x3] ss:$9 sm:$0xff] %v496_v29  ;;  %v539_v29 = vstv %s1120_s0 }
 0x1eb   : > { %509 = vst [vmem:[#allocation1 + $0x4] ss:$9 sm:$0xff] %v497_v30  ;;  %v538_v28 = vmul.f32 %v537_v20, %v536_v18 }
 0x1ec   : > { %511 = vst [vmem:[#allocation1 + $0x5] ss:$9 sm:$0xff] %v498_v31 }
 0x1ed   : > { %513 = vst [vmem:[#allocation1 + $0x6] ss:$9 sm:$0xff] %v499_v32  ;;  %v540_v32 = vadd.f32 %v539_v29, %v538_v28  ;;  %v663_v29 = vstv %s1122_s22 }
 0x1ee   : > { %515 = vst [vmem:[#allocation1 + $0x7] ss:$9 sm:$0xff] %v500_v33  ;;  %v617_v33 = vstv %s1126_s25  ;;  %s935_s25 = scalar_lea.hbm %s1832_s7, %s1521_s8 }
 0x1f5   : > { %v516_v34 = vld [vmem:[#allocation1] sm:$0xff] }
 0x1f6   : > { %518 = vperm.xlu1 %1204, %v516_v34   ;;  %v618_v34 = vmul.f32 %v617_v33, %v540_v32  ;;  %v741_v33 = vstv %s1127_s10 }
 0x1f8   : > { %v620_v35 = vperm.slane %v618_v34, 0  ;;  %v621_v36 = vperm.slane %v618_v34, 1  ;;  %v622_v38 = vperm.slane %v618_v34, 2  ;;  %v623_v39 = vperm.slane %v618_v34, 3 }
 0x1f9   : > { %v624_v40 = vperm.slane %v618_v34, 4  ;;  %v625_v41 = vperm.slane %v618_v34, 5  ;;  %v626_v42 = vperm.slane %v618_v34, 6  ;;  %v627_v43 = vperm.slane %v618_v34, 7 }
 0x268   : > { %v519_v46 = vpop.permute.xlu1 %518 }
 0x269   : > { %v520_v47 = vperm.slane %v519_v46, %v1684_v16 }
 0x26b   : > { %v522_v50 = vadd.f32 %v520_v47, %v431_v45 }
 0x26d   : > { %v525_v53 = vadd.f32 %v524_v48, %v522_v50  ;;  %v651_v50 = vstv %s650_s2  ;;  %s939_s2 = sshll.u32 %s935_s25, 4  ;;  %s940_s2 = int_to_ptr.hbm [resolvable:$true] %s939_s2 }
 0x26e   : > { %s1359_s9 = sshra.s32 %s940_s2, 4  ;;  %s1360_s9 = int_to_ptr.hbm [resolvable:$true] %s1359_s9 }
 0x26f   : > { %v528_v54 = vmul.f32 %v527_v51, %v525_v53  ;;  %v653_v51 = vstv %s1130_s23  ;;  %s937_s23 = sshll.u32 %s403_s18, 4  ;;  %p1366_p4 = scmp.lt.s32.totalorder %s1360_s9, %s1832_s7  ;;  %s938_s23 = int_to_ptr.vmem [resolvable:$true] %s937_s23 }
 0x271   : > { %v531_v55 = vadd.f32 %v530_v52, %v528_v54 }
 0x273   : > { %1207 = vtanh.f32 %v531_v55 }
 0x279   : > { %v1710_v56 = vpop.eup %1207 }
 0x27a   : > { %v542_v57 = vperm.slane %v1710_v56, 0  ;;  %v654_v53 = vmul.f32 %v1710_v56, %v653_v51  ;;  %v777_v51 = vstv %s1131_s26  ;;  %s1365_s26 = scalar_lea.hbm %s1832_s7, 2 }
 0x27c   : > { %v544_v58 = vmul.f32 %v542_v57, %v1673_v0 }
 0x27e   : > { %v545_v59 = vsel %vm447_vm0, %v544_v58, 0.0 }
 0x27f   : > { %546 = vadd.xlane.f32.xlu2 %v545_v59 }
 0x2f2   : > { %v547_v60 = vpop.xlane.xlu2 %546 }
 0x2f3   : > { %v549_v61 = vperm.slane %v547_v60, 0  ;;  %v550_v62 = vperm.slane %v547_v60, 1  ;;  %v551_v63 = vperm.slane %v547_v60, 2  ;;  %v552_v1 = vperm.slane %v547_v60, 3 }
 0x2f4   : > { %v553_v2 = vperm.slane %v547_v60, 4  ;;  %v554_v3 = vperm.slane %v547_v60, 5  ;;  %v555_v4 = vperm.slane %v547_v60, 6  ;;  %v556_v5 = vperm.slane %v547_v60, 7 }
 0x2f5   : > { %557 = vst [vmem:[#allocation1] ss:$9 sm:$0xff] %v549_v61 }
 0x2f6   : > { %559 = vst [vmem:[#allocation1 + $0x1] ss:$9 sm:$0xff] %v550_v62 }
 0x2f7   : > { %561 = vst [vmem:[#allocation1 + $0x2] ss:$9 sm:$0xff] %v551_v63 }
 0x2f8   : > { %563 = vst [vmem:[#allocation1 + $0x3] ss:$9 sm:$0xff] %v552_v1 }
 0x2f9   : > { %565 = vst [vmem:[#allocation1 + $0x4] ss:$9 sm:$0xff] %v553_v2 }
 0x2fa   : > { %567 = vst [vmem:[#allocation1 + $0x5] ss:$9 sm:$0xff] %v554_v3 }
 0x2fb   : > { %569 = vst [vmem:[#allocation1 + $0x6] ss:$9 sm:$0xff] %v555_v4 }
 0x2fc   : > { %571 = vst [vmem:[#allocation1 + $0x7] ss:$9 sm:$0xff] %v556_v5 }
 0x303   : > { %v572_v6 = vld [vmem:[#allocation1] sm:$0xff] }
 0x304   : > { %574 = vperm.xlu2 %1205, %v572_v6  }
 0x35e   : > { %v575_v7 = vpop.permute.xlu2 %574 }
 0x35f   : > { %v576_v8 = vperm.slane %v575_v7, %v1684_v16 }
 0x361   : > { %v578_v9 = vsub.f32 %v1686_v17, %v576_v8 }
 0x363   : > { %v580_v10 = vperm.slane %v578_v9, 0 }
 0x365   : > { %v582_v11 = vmul.f32 %v580_v10, %v1691_v21 }
 0x367   : > { %v583_v12 = vsel %vm447_vm0, %v582_v11, 0.0 }
 0x368   : > { %584 = vadd.xlane.f32.xlu2 %v583_v12 }
 0x3db   : > { %v1720_v19 = vpop.xlane.xlu2 %584 }
 0x3dc   : > { %v587_v22 = vperm.slane %v1720_v19, 0  ;;  %v588_v23 = vperm.slane %v1720_v19, 1  ;;  %v589_v24 = vperm.slane %v1720_v19, 2  ;;  %v590_v26 = vperm.slane %v1720_v19, 3 }
 0x3dd   : > { %v591_v27 = vperm.slane %v1720_v19, 4  ;;  %v592_v25 = vperm.slane %v1720_v19, 5  ;;  %v593_v30 = vperm.slane %v1720_v19, 6  ;;  %v594_v31 = vperm.slane %v1720_v19, 7 }
 0x3de   : > { %595 = vst [vmem:[#allocation1] ss:$9 sm:$0xff] %v587_v22  ;;  %v658_v14 = vmul.f32 %v657_v13, %v1720_v19  ;;  %v661_v22 = vstv %s1114_s21  ;;  %s1361_s21 = scalar_lea.hbm %s1360_s9, 1 }
 0x3df   : > { %597 = vst [vmem:[#allocation1 + $0x1] ss:$9 sm:$0xff] %v588_v23  ;;  %p1362_p13 = scmp.ne.s32.totalorder %s1360_s9, %s1361_s21  ;;  %p1367_p0 = scmp.lt.s32.totalorder %s1365_s26, %s1361_s21 }
 0x3e0   : > { %599 = vst [vmem:[#allocation1 + $0x2] ss:$9 sm:$0xff] %v589_v24  ;;  %v660_v18 = vadd.f32 %v659_v15, %v658_v14  ;;  %v783_v14 = vstv %s1123_s19 }
 0x3e1   : > { %601 = vst [vmem:[#allocation1 + $0x3] ss:$9 sm:$0xff] %v590_v26  ;;  %p1363_p2 = pnand %p1362_p13, %p1546_p11  ;;  %p1368_p5 = por %p1367_p0, %p1366_p4 }
 0x3e2   : > { %603 = vst [vmem:[#allocation1 + $0x4] ss:$9 sm:$0xff] %v591_v27 }
 0x3e3   : > { %605 = vst [vmem:[#allocation1 + $0x5] ss:$9 sm:$0xff] %v592_v25  ;;  %v662_v25 = vmul.f32 %v661_v22, %v660_v18  ;;  %v785_v22 = vstv %s1116_s11  ;;  %p1364_p3 = pneg %p1363_p2 }
 0x3e4   : > { %607 = vst [vmem:[#allocation1 + $0x6] ss:$9 sm:$0xff] %v593_v30 }
 0x3e5   : > { %609 = vst [vmem:[#allocation1 + $0x7] ss:$9 sm:$0xff] %v594_v31  ;;  %v664_v32 = vadd.f32 %v663_v29, %v662_v25  ;;  %v787_v25 = vstv %s1124_s12  ;;  %p1369_p7 = pnand %p1368_p5, %p1364_p3 }
 0x3e7   : > { %v742_v34 = vmul.f32 %v741_v33, %v664_v32 }
 0x3ec   : > { %v610_v37 = vld [vmem:[#allocation1] sm:$0xff] }
 0x3ed   : > { %628 = vst [vmem:[#allocation1] ss:$9 sm:$0xff] %v620_v35  ;;  %612 = vperm.xlu1 %1204, %v610_v37   ;;  %v744_v35 = vperm.slane %v742_v34, 0 }
 0x3ee   : > { %630 = vst [vmem:[#allocation1 + $0x1] ss:$9 sm:$0xff] %v621_v36  ;;  %v745_v36 = vperm.slane %v742_v34, 1 }
 0x3ef   : > { %632 = vst [vmem:[#allocation1 + $0x2] ss:$9 sm:$0xff] %v622_v38  ;;  %v746_v38 = vperm.slane %v742_v34, 2 }
 0x3f0   : > { %634 = vst [vmem:[#allocation1 + $0x3] ss:$9 sm:$0xff] %v623_v39  ;;  %v747_v39 = vperm.slane %v742_v34, 3 }
 0x3f1   : > { %636 = vst [vmem:[#allocation1 + $0x4] ss:$9 sm:$0xff] %v624_v40  ;;  %v748_v40 = vperm.slane %v742_v34, 4 }
 0x3f2   : > { %638 = vst [vmem:[#allocation1 + $0x5] ss:$9 sm:$0xff] %v625_v41  ;;  %v749_v41 = vperm.slane %v742_v34, 5 }
 0x3f3   : > { %640 = vst [vmem:[#allocation1 + $0x6] ss:$9 sm:$0xff] %v626_v42  ;;  %v750_v42 = vperm.slane %v742_v34, 6 }
 0x3f4   : > { %642 = vst [vmem:[#allocation1 + $0x7] ss:$9 sm:$0xff] %v627_v43  ;;  %v751_v43 = vperm.slane %v742_v34, 7 }
 0x3fb   : > { %v643_v44 = vld [vmem:[#allocation1] sm:$0xff] }
 0x3fc   : > { %645 = vperm.xlu1 %1204, %v643_v44  }
 0x45f   : > { %v613_v45 = vpop.permute.xlu1 %612 }
 0x460   : > { %v614_v46 = vperm.slane %v613_v45, %v1684_v16 }
 0x462   : > { %v616_v48 = vadd.f32 %v1710_v56, %v614_v46 }
 0x46e   : > { %v646_v47 = vpop.permute.xlu1 %645 }
 0x46f   : > { %v647_v49 = vperm.slane %v646_v47, %v1684_v16 }
 0x471   : > { %v649_v52 = vadd.f32 %v647_v49, %v616_v48 }
 0x473   : > { %v652_v54 = vmul.f32 %v651_v50, %v649_v52  ;;  %v775_v50 = vstv %s774_s13 }
 0x475   : > { %v655_v55 = vadd.f32 %v654_v53, %v652_v54 }
 0x477   : > { %1209 = vtanh.f32 %v655_v55 }
 0x47d   : > { %v1734_v57 = vpop.eup %1209 }
 0x47e   : > { %v666_v58 = vperm.slane %v1734_v57, 0  ;;  %v778_v53 = vmul.f32 %v1734_v57, %v777_v51 }
 0x480   : > { %v668_v59 = vmul.f32 %v666_v58, %v1673_v0 }
 0x482   : > { %v669_v60 = vsel %vm447_vm0, %v668_v59, 0.0 }
 0x483   : > { %670 = vadd.xlane.f32.xlu0 %v669_v60 }
 0x4f6   : > { %v671_v61 = vpop.xlane.xlu0 %670 }
 0x4f7   : > { %v673_v62 = vperm.slane %v671_v61, 0  ;;  %v674_v63 = vperm.slane %v671_v61, 1  ;;  %v675_v1 = vperm.slane %v671_v61, 2  ;;  %v676_v2 = vperm.slane %v671_v61, 3 }
 0x4f8   : > { %v677_v3 = vperm.slane %v671_v61, 4  ;;  %v678_v56 = vperm.slane %v671_v61, 5  ;;  %v679_v4 = vperm.slane %v671_v61, 6  ;;  %v680_v5 = vperm.slane %v671_v61, 7 }
 0x4f9   : > { %681 = vst [vmem:[#allocation1] ss:$9 sm:$0xff] %v673_v62 }
 0x4fa   : > { %683 = vst [vmem:[#allocation1 + $0x1] ss:$9 sm:$0xff] %v674_v63 }
 0x4fb   : > { %685 = vst [vmem:[#allocation1 + $0x2] ss:$9 sm:$0xff] %v675_v1 }
 0x4fc   : > { %687 = vst [vmem:[#allocation1 + $0x3] ss:$9 sm:$0xff] %v676_v2 }
 0x4fd   : > { %689 = vst [vmem:[#allocation1 + $0x4] ss:$9 sm:$0xff] %v677_v3 }
 0x4fe   : > { %691 = vst [vmem:[#allocation1 + $0x5] ss:$9 sm:$0xff] %v678_v56 }
 0x4ff   : > { %693 = vst [vmem:[#allocation1 + $0x6] ss:$9 sm:$0xff] %v679_v4 }
 0x500   : > { %695 = vst [vmem:[#allocation1 + $0x7] ss:$9 sm:$0xff] %v680_v5 }
 0x507   : > { %v696_v6 = vld [vmem:[#allocation1] sm:$0xff] }
 0x508   : > { %698 = vperm.xlu1 %1204, %v696_v6  }
 0x57a   : > { %v699_v7 = vpop.permute.xlu1 %698 }
 0x57b   : > { %v700_v8 = vperm.slane %v699_v7, %v1684_v16 }
 0x57d   : > { %v702_v9 = vsub.f32 %v1686_v17, %v700_v8 }
 0x57f   : > { %v704_v10 = vperm.slane %v702_v9, 0 }
 0x581   : > { %v706_v11 = vmul.f32 %v704_v10, %v1691_v21 }
 0x583   : > { %v707_v12 = vsel %vm447_vm0, %v706_v11, 0.0 }
 0x584   : > { %708 = vadd.xlane.f32.xlu1 %v707_v12  ;;  %v781_v12 = vstv %s1115_s24 }
 0x5f7   : > { %v1744_v20 = vpop.xlane.xlu1 %708 }
 0x5f8   : > { %v711_v23 = vperm.slane %v1744_v20, 0  ;;  %v712_v24 = vperm.slane %v1744_v20, 1  ;;  %v713_v26 = vperm.slane %v1744_v20, 2  ;;  %v714_v27 = vperm.slane %v1744_v20, 3 }
 0x5f9   : > { %v715_v28 = vperm.slane %v1744_v20, 4  ;;  %v716_v19 = vperm.slane %v1744_v20, 5  ;;  %v717_v30 = vperm.slane %v1744_v20, 6  ;;  %v718_v31 = vperm.slane %v1744_v20, 7 }
 0x5fa   : > { %719 = vst [vmem:[#allocation1] ss:$9 sm:$0xff] %v711_v23  ;;  %v782_v13 = vmul.f32 %v781_v12, %v1744_v20 }
 0x5fb   : > { %721 = vst [vmem:[#allocation1 + $0x1] ss:$9 sm:$0xff] %v712_v24 }
 0x5fc   : > { %723 = vst [vmem:[#allocation1 + $0x2] ss:$9 sm:$0xff] %v713_v26  ;;  %v784_v15 = vadd.f32 %v783_v14, %v782_v13 }
 0x5fd   : > { %725 = vst [vmem:[#allocation1 + $0x3] ss:$9 sm:$0xff] %v714_v27 }
 0x5fe   : > { %727 = vst [vmem:[#allocation1 + $0x4] ss:$9 sm:$0xff] %v715_v28  ;;  %v786_v27 = vmul.f32 %v785_v22, %v784_v15 }
 0x5ff   : > { %729 = vst [vmem:[#allocation1 + $0x5] ss:$9 sm:$0xff] %v716_v19 }
 0x600   : > { %731 = vst [vmem:[#allocation1 + $0x6] ss:$9 sm:$0xff] %v717_v30  ;;  %v788_v30 = vadd.f32 %v787_v25, %v786_v27 }
 0x601   : > { %733 = vst [vmem:[#allocation1 + $0x7] ss:$9 sm:$0xff] %v718_v31  ;;  %v865_v31 = vstv %s1128_s20 }
 0x602   : > { %v866_v32 = vmul.f32 %v865_v31, %v788_v30 }
 0x604   : > { %v868_v33 = vperm.slane %v866_v32, 0  ;;  %v869_v34 = vperm.slane %v866_v32, 1 }
 0x608   : > { %v734_v37 = vld [vmem:[#allocation1] sm:$0xff] }
 0x609   : > { %752 = vst [vmem:[#allocation1] ss:$9 sm:$0xff] %v744_v35  ;;  %736 = vperm.xlu2 %1205, %v734_v37   ;;  %v871_v37 = vperm.slane %v866_v32, 3 }
 0x60a   : > { %754 = vst [vmem:[#allocation1 + $0x1] ss:$9 sm:$0xff] %v745_v36  ;;  %v870_v36 = vperm.slane %v866_v32, 2 }
 0x60b   : > { %756 = vst [vmem:[#allocation1 + $0x2] ss:$9 sm:$0xff] %v746_v38  ;;  %v872_v38 = vperm.slane %v866_v32, 4 }
 0x60c   : > { %758 = vst [vmem:[#allocation1 + $0x3] ss:$9 sm:$0xff] %v747_v39  ;;  %v873_v39 = vperm.slane %v866_v32, 5 }
 0x60d   : > { %760 = vst [vmem:[#allocation1 + $0x4] ss:$9 sm:$0xff] %v748_v40  ;;  %v874_v40 = vperm.slane %v866_v32, 6 }
 0x60e   : > { %762 = vst [vmem:[#allocation1 + $0x5] ss:$9 sm:$0xff] %v749_v41  ;;  %v875_v41 = vperm.slane %v866_v32, 7 }
 0x60f   : > { %764 = vst [vmem:[#allocation1 + $0x6] ss:$9 sm:$0xff] %v750_v42 }
 0x610   : > { %766 = vst [vmem:[#allocation1 + $0x7] ss:$9 sm:$0xff] %v751_v43 }
 0x617   : > { %v767_v44 = vld [vmem:[#allocation1] sm:$0xff] }
 0x618   : > { %769 = vperm.xlu0 %1203, %v767_v44  }
 0x663   : > { %v737_v45 = vpop.permute.xlu2 %736 }
 0x664   : > { %v738_v46 = vperm.slane %v737_v45, %v1684_v16 }
 0x666   : > { %v740_v48 = vadd.f32 %v1734_v57, %v738_v46 }
 0x68a   : > { %v770_v47 = vpop.permute.xlu0 %769 }
 0x68b   : > { %v771_v49 = vperm.slane %v770_v47, %v1684_v16 }
 0x68d   : > { %v773_v52 = vadd.f32 %v771_v49, %v740_v48 }
 0x68f   : > { %v776_v54 = vmul.f32 %v775_v50, %v773_v52 }
 0x691   : > { %v779_v55 = vadd.f32 %v778_v53, %v776_v54 }
 0x693   : > { %1211 = vtanh.f32 %v779_v55 }
 0x699   : > { %v1758_v58 = vpop.eup %1211 }
 0x69a   : > { %v790_v59 = vperm.slane %v1758_v58, 0 }
 0x69c   : > { %v792_v60 = vmul.f32 %v790_v59, %v1673_v0 }
 0x69e   : > { %v793_v61 = vsel %vm447_vm0, %v792_v60, 0.0 }
 0x69f   : > { %794 = vadd.xlane.f32.xlu2 %v793_v61 }
 0x712   : > { %v795_v62 = vpop.xlane.xlu2 %794 }
 0x713   : > { %v797_v63 = vperm.slane %v795_v62, 0  ;;  %v798_v1 = vperm.slane %v795_v62, 1  ;;  %v799_v2 = vperm.slane %v795_v62, 2  ;;  %v800_v3 = vperm.slane %v795_v62, 3 }
 0x714   : > { %v801_v56 = vperm.slane %v795_v62, 4  ;;  %v802_v57 = vperm.slane %v795_v62, 5  ;;  %v803_v4 = vperm.slane %v795_v62, 6  ;;  %v804_v5 = vperm.slane %v795_v62, 7 }
 0x715   : > { %805 = vst [vmem:[#allocation1] ss:$9 sm:$0xff] %v797_v63 }
 0x716   : > { %807 = vst [vmem:[#allocation1 + $0x1] ss:$9 sm:$0xff] %v798_v1 }
 0x717   : > { %809 = vst [vmem:[#allocation1 + $0x2] ss:$9 sm:$0xff] %v799_v2 }
 0x718   : > { %811 = vst [vmem:[#allocation1 + $0x3] ss:$9 sm:$0xff] %v800_v3 }
 0x719   : > { %813 = vst [vmem:[#allocation1 + $0x4] ss:$9 sm:$0xff] %v801_v56 }
 0x71a   : > { %815 = vst [vmem:[#allocation1 + $0x5] ss:$9 sm:$0xff] %v802_v57 }
 0x71b   : > { %817 = vst [vmem:[#allocation1 + $0x6] ss:$9 sm:$0xff] %v803_v4 }
 0x71c   : > { %819 = vst [vmem:[#allocation1 + $0x7] ss:$9 sm:$0xff] %v804_v5 }
 0x723   : > { %v820_v0 = vld [vmem:[#allocation1] sm:$0xff] }
 0x724   : > { %822 = vperm.xlu1 %1204, %v820_v0  }
 0x796   : > { %v823_v6 = vpop.permute.xlu1 %822 }
 0x797   : > { %v824_v7 = vperm.slane %v823_v6, %v1684_v16 }
 0x799   : > { %v826_v8 = vsub.f32 %v1686_v17, %v824_v7 }
 0x79b   : > { %v828_v9 = vperm.slane %v826_v8, 0 }
 0x79d   : > { %v830_v10 = vmul.f32 %v828_v9, %v1691_v21 }
 0x79f   : > { %v831_v11 = vsel %vm447_vm0, %v830_v10, 0.0 }
 0x7a0   : > { %832 = vadd.xlane.f32.xlu0 %v831_v11 }
 0x813   : > { %v833_v18 = vpop.xlane.xlu0 %832 }
 0x814   : > { %v835_v23 = vperm.slane %v833_v18, 0  ;;  %v836_v17 = vperm.slane %v833_v18, 1  ;;  %v837_v24 = vperm.slane %v833_v18, 2  ;;  %v838_v26 = vperm.slane %v833_v18, 3 }
 0x815   : > { %v839_v21 = vperm.slane %v833_v18, 4  ;;  %v840_v28 = vperm.slane %v833_v18, 5  ;;  %v841_v19 = vperm.slane %v833_v18, 6  ;;  %v842_v20 = vperm.slane %v833_v18, 7 }
 0x816   : > { %843 = vst [vmem:[#allocation1] ss:$9 sm:$0xff] %v835_v23  ;;  %v906_v29 = vperm.slane %v833_v18, %v1684_v16 }
 0x817   : > { %845 = vst [vmem:[#allocation1 + $0x1] ss:$9 sm:$0xff] %v836_v17 }
 0x818   : > { %847 = vst [vmem:[#allocation1 + $0x2] ss:$9 sm:$0xff] %v837_v24 }
 0x819   : > { %849 = vst [vmem:[#allocation1 + $0x3] ss:$9 sm:$0xff] %v838_v26 }
 0x81a   : > { %851 = vst [vmem:[#allocation1 + $0x4] ss:$9 sm:$0xff] %v839_v21 }
 0x81b   : > { %853 = vst [vmem:[#allocation1 + $0x5] ss:$9 sm:$0xff] %v840_v28 }
 0x81c   : > { %855 = vst [vmem:[#allocation1 + $0x6] ss:$9 sm:$0xff] %v841_v19 }
 0x81d   : > { %857 = vst [vmem:[#allocation1 + $0x7] ss:$9 sm:$0xff] %v842_v20 }
 0x81e   : > { %908 = vst.msk [vmem:[%s403_s18] sm:$0x1] %vm904_vm1, %v906_v29 }
 0x824   : > { %v858_v35 = vld [vmem:[#allocation1] sm:$0xff] }
 0x825   : > { %860 = vperm.xlu1 %1204, %v858_v35   ;;  %876 = vst [vmem:[#allocation1] ss:$9 sm:$0xff] %v868_v33 }
 0x826   : > { %878 = vst [vmem:[#allocation1 + $0x1] ss:$9 sm:$0xff] %v869_v34 }
 0x827   : > { %880 = vst [vmem:[#allocation1 + $0x2] ss:$9 sm:$0xff] %v870_v36 }
 0x828   : > { %882 = vst [vmem:[#allocation1 + $0x3] ss:$9 sm:$0xff] %v871_v37 }
 0x829   : > { %884 = vst [vmem:[#allocation1 + $0x4] ss:$9 sm:$0xff] %v872_v38 }
 0x82a   : > { %886 = vst [vmem:[#allocation1 + $0x5] ss:$9 sm:$0xff] %v873_v39 }
 0x82b   : > { %888 = vst [vmem:[#allocation1 + $0x6] ss:$9 sm:$0xff] %v874_v40 }
 0x82c   : > { %890 = vst [vmem:[#allocation1 + $0x7] ss:$9 sm:$0xff] %v875_v41 }
 0x833   : > { %v891_v42 = vld [vmem:[#allocation1] sm:$0xff] }
 0x834   : > { %893 = vperm.xlu1 %1204, %v891_v42  }
 0x835   : > { %1372 = shalt.err (!%p1369_p7)
}
 0x836   : > { %1144 = dma.vmem_to_hbm [thread:$0]  (%p1546_p11), %s938_s23, 16, %s940_s2, %s914_s14  }
 0x837   : > { %s1132_s19 = sld [smem:[#allocation3 + $0x17]]  ;;  %s922_s18 = scalar_lea.hbm %s1831_s6, %s1521_s8 }
 0x838   : > { %s397_s27 = scalar_lea.vmem [#allocation12], %s1651_s17  ;;  %s926_s25 = sshll.u32 %s922_s18, 4  ;;  %s927_s25 = int_to_ptr.hbm [resolvable:$true] %s926_s25 }
 0x839   : > { %s924_s0 = sshll.u32 %s397_s27, 4  ;;  %s910_s23 = scalar_lea.sflag [#allocation6], %s1651_s17  ;;  %s925_s0 = int_to_ptr.vmem [resolvable:$true] %s924_s0 }
 0x83a   : > { %s1387_s2 = sshra.s32 %s927_s25, 4  ;;  %s1393_s21 = scalar_lea.hbm %s1831_s6, 2  ;;  %s1388_s2 = int_to_ptr.hbm [resolvable:$true] %s1387_s2 }
 0x83b   : > { %s1389_s14 = scalar_lea.hbm %s1388_s2, 1  ;;  %p1394_p6 = scmp.lt.s32.totalorder %s1388_s2, %s1831_s6 }
 0x83c   : > { %p1390_p8 = scmp.ne.s32.totalorder %s1388_s2, %s1389_s14  ;;  %p1395_p13 = scmp.lt.s32.totalorder %s1393_s21, %s1389_s14 }
 0x83d   : > { %s898_s11 = ssub.f32 1.0, %s1132_s19  ;;  %v901_v49 = vstv %s1132_s19 }
 0x83e   : > { %v902_v51 = vmul.f32 %v1758_v58, %v901_v49  ;;  %p1391_p10 = pnand %p1390_p8, %p1546_p11  ;;  %p1396_p2 = por %p1395_p13, %p1394_p6 }
 0x83f   : > { %v899_v48 = vstv %s898_s11 }
 0x840   : > { %p1392_p1 = pneg %p1391_p10 }
 0x842   : > { %p1397_p3 = pnand %p1396_p2, %p1392_p1 }
 0x897   : > { %v861_v43 = vpop.permute.xlu1 %860 }
 0x898   : > { %v862_v44 = vperm.slane %v861_v43, %v1684_v16 }
 0x89a   : > { %v864_v46 = vadd.f32 %v1758_v58, %v862_v44 }
 0x8a6   : > { %v894_v45 = vpop.permute.xlu1 %893 }
 0x8a7   : > { %v895_v47 = vperm.slane %v894_v45, %v1684_v16 }
 0x8a9   : > { %v897_v50 = vadd.f32 %v895_v47, %v864_v46 }
 0x8ab   : > { %v900_v52 = vmul.f32 %v899_v48, %v897_v50 }
 0x8ad   : > { %v903_v53 = vadd.f32 %v902_v51, %v900_v52 }
 0x8af   : > { %905 = vst.msk [vmem:[%s397_s27] sm:$0x1] %vm904_vm1, %v903_v53 }
 0x8b0   : > { %1400 = shalt.err (!%p1397_p3)
}
 0x8b1   : > { %1143 = dma.vmem_to_hbm [thread:$0]  (%p1546_p11), %s925_s0, 16, %s927_s25, %s910_s23  }
 0x8b2 PF: > { %s951_s17 = sand.u32 1, %s1441_s28   ;;  %p1161_p4 = pnand %p1102_p9, %p1550_p12 }
 0x8b3   : > { %s952_s26 = scalar_lea.sflag [#allocation6], %s951_s17 }
 0x8b4   : > { %p1162_p0 = pneg %p1161_p4 }
 0x8b6   : > { %1432 = dma.done.wait (%p1162_p0), %s952_s26, 16  }
 0x8b7   : > { %1434 = vsyncadd (%p1162_p0), %s952_s26, 4294967280  ;;  %s961_s13 = scalar_lea.sflag [#allocation14], %s951_s17 }
 0x8b8   : > { %1436 = dma.done.wait (%p1162_p0), %s961_s13, 16  }
 0x8b9   : > { %1438 = vsyncadd (%p1162_p0), %s961_s13, 4294967280  ;;  %s1850_s30 = sld [smem:[#allocation22_spill]]  ;;  %s1853_s28 = smov %s1445_s29 }
 0x8ba   : > { %s1851_s24 = sld [smem:[#allocation21_spill]] }
 0x8bb   : > { %s1852_s0 = sld [smem:[#allocation23_spill]] }
 0x8bf   : > { %p38_p11 = scmp.ge.s32.totalorder %s1850_s30, 4  }
 0x8c0   : > { %s1854_s29 = smov %s1851_s24 }
 0x8c1   :  { %40 = sbr.rel (!%p38_p11) target bundleno = 17 (0x11), region = 219 }
 0x8c6   :  { %966 = vsyncpa [#allocation5], 1 }
 0x8c7   :  { %968 = vsyncpa [#allocation5 + $0x1], 1 }
 0x8c8   :  { %969 = vsyncpa [#allocation8], 1 }
 0x8c9   :  { %971 = vsyncpa [#allocation8 + $0x1], 1 }
 0x8ca   :  { %972 = vsyncpa [#allocation11], 1 }
 0x8cb   :  { %974 = vsyncpa [#allocation11 + $0x1], 1 }
 0x8cc   :  { %975 = vsyncpa [#allocation6], 1 }
 0x8cd   :  { %977 = vsyncpa [#allocation6 + $0x1], 1 }
 0x8ce   :  { %978 = vsyncpa [#allocation14], 1 }
 0x8cf   :  { %980 = vsyncpa [#allocation14 + $0x1], 1 }

</bundles_post_ra>
